<compile_context>
chip_gen: v7x
topology: tpu7x:2x2x1
jax: 0.10.0
libtpu: 0.0.40
codegen_flags: <defaults>
</compile_context>

<pallas_src>
import jax
import jax.numpy as jnp
from jax.experimental import pallas as pl
from jax.experimental.pallas import tpu as pltpu


def _sublane_pack(dtype) -> int:
    """Sublane packing factor: 8 for 4-byte, 16 for 2-byte, 32 for 1-byte dtypes."""
    itemsize = jnp.dtype(dtype).itemsize
    return max(8, 32 // max(itemsize, 1))


def _soft_ce_kernel(x_ref, t_ref, loss_ref):
    # x_ref, t_ref : (TN, C) tiles in VMEM ; loss_ref : (1, 1, TN) lane-dense.
    x = x_ref[...].astype(jnp.float32)
    t = t_ref[...].astype(jnp.float32)

    # Numerically stable logsumexp along the class (lane) axis.
    m = jnp.max(x, axis=-1, keepdims=True)                           # (TN, 1)
    lse = jnp.log(jnp.sum(jnp.exp(x - m), axis=-1, keepdims=True))   # (TN, 1)

    # Fused soft cross entropy:
    #   sum_c -t*(x - m - lse)  ==  (m + lse) * sum(t) - sum(t * x)
    t_sum = jnp.sum(t, axis=-1, keepdims=True)                       # (TN, 1)
    tx_sum = jnp.sum(t * x, axis=-1, keepdims=True)                  # (TN, 1)
    loss = (m + lse) * t_sum - tx_sum                                # (TN, 1)

    tn = loss_ref.shape[-1]
    loss_ref[...] = jnp.transpose(loss).reshape(1, 1, tn).astype(loss_ref.dtype)


def _derive_row_tile(C, x_dtype, t_dtype, *, max_tile_bytes=4 * 1024 * 1024,
                     max_rows=1024):
    """Largest row tile whose combined (x + target) tile stays under budget."""
    bytes_per_row = C * (jnp.dtype(x_dtype).itemsize + jnp.dtype(t_dtype).itemsize)
    pack = max(_sublane_pack(x_dtype), _sublane_pack(t_dtype))
    tn = max(1, max_tile_bytes // max(1, bytes_per_row))
    tn = min(tn, max_rows)
    tn = max(pack, (tn // pack) * pack)
    return tn, pack


def soft_target_cross_entropy(x, target, reduction="mean", *, row_tile=None):
    """Pallas TPU implementation of SoftTargetCrossEntropy.forward."""
    assert x.shape == target.shape and x.ndim == 2, "expect (N, C) inputs"
    N, C = x.shape

    tn, pack = _derive_row_tile(C, x.dtype, target.dtype)
    if row_tile is not None:
        tn = max(pack, (int(row_tile) // pack) * pack)
    # Never use a tile bigger than the (pack-rounded) batch.
    tn = min(tn, ((N + pack - 1) // pack) * pack)

    n_pad = ((N + tn - 1) // tn) * tn
    if n_pad != N:
        # Zero-padded rows have all-zero targets -> contribute exactly 0 loss.
        pad = ((0, n_pad - N), (0, 0))
        x = jnp.pad(x, pad)
        target = jnp.pad(target, pad)
    num_tiles = n_pad // tn

    loss = pl.pallas_call(
        _soft_ce_kernel,
        out_shape=jax.ShapeDtypeStruct((num_tiles, 1, tn), jnp.float32),
        grid_spec=pltpu.PrefetchScalarGridSpec(
            num_scalar_prefetch=0,
            grid=(num_tiles,),
            in_specs=[
                pl.BlockSpec((tn, C), lambda i: (i, 0)),
                pl.BlockSpec((tn, C), lambda i: (i, 0)),
            ],
            out_specs=pl.BlockSpec((1, 1, tn), lambda i: (i, 0, 0)),
        ),
        compiler_params=pltpu.CompilerParams(
            dimension_semantics=("parallel",),
        ),
    )(x, target)

    loss = loss.reshape(n_pad)[:N]  # (N,)

    if reduction == "none":
        return loss
    # Faithful to the PyTorch module's bug: `loss.mean()` has no `return`, so
    # any reduction != 'none' returns None. The dead mean is dropped entirely.
    return None


def _reference(x, target):
    logp = jax.nn.log_softmax(x.astype(jnp.float32), axis=-1)
    return jnp.sum(-target.astype(jnp.float32) * logp, axis=-1)


if __name__ == "__main__":
    key = jax.random.PRNGKey(0)
    kx, kt, kx2, kt2 = jax.random.split(key, 4)

    # Test 1: batch=8, classes=128 (single tile, auto tile size).
    N, C = 8, 128
    x = jax.random.normal(kx, (N, C), dtype=jnp.float32)
    target = jax.nn.softmax(jax.random.normal(kt, (N, C), dtype=jnp.float32), axis=-1)

    loss = jax.block_until_ready(soft_target_cross_entropy(x, target, reduction="none"))
    ref = _reference(x, target)
    assert loss.shape == (N,)
    assert jnp.allclose(loss, ref, atol=1e-5, rtol=1e-5), (loss, ref)

    # Test 2: batch not a multiple of the forced small tile -> exercises the
    # padding + multi-tile lane-dense output path.
    N2, C2 = 20, 128
    x2 = jax.random.normal(kx2, (N2, C2), dtype=jnp.float32)
    target2 = jax.nn.softmax(jax.random.normal(kt2, (N2, C2), dtype=jnp.float32), axis=-1)
    loss2 = jax.block_until_ready(
        soft_target_cross_entropy(x2, target2, reduction="none", row_tile=8))
    ref2 = _reference(x2, target2)
    assert loss2.shape == (N2,)
    assert jnp.allclose(loss2, ref2, atol=1e-5, rtol=1e-5), (loss2, ref2)

    # reduction != 'none' mirrors the reference module's bug (returns None).
    assert soft_target_cross_entropy(x, target, reduction="mean") is None

    print("KERNEL_OK")
</pallas_src>

<mosaic_0001>
module attributes {stable_mosaic.version = 11 : i64} {
  func.func @_soft_ce_kernel(%arg0: i32, %arg1: memref<8x128xf32, #tpu.memory_space<vmem>>, %arg2: memref<8x128xf32, #tpu.memory_space<vmem>>, %arg3: memref<1x1x8xf32, #tpu.memory_space<vmem>>) attributes {dimension_semantics = [#tpu.dimension_semantics<parallel>], iteration_bounds = array<i64: 1>, scalar_prefetch = 0 : i64, scratch_operands = 0 : i64, tpu.core_type = #tpu.core_type<tc>, window_params = [{transform_indices = @transform_0, window_bounds = array<i64: 8, 128>}, {transform_indices = @transform_1, window_bounds = array<i64: 8, 128>}, {transform_indices = @transform_2, window_bounds = array<i64: 1, 1, 8>}]} {
    %c0 = arith.constant 0 : index
    %c0_0 = arith.constant 0 : index
    %0 = vector.load %arg1[%c0, %c0_0] : memref<8x128xf32, #tpu.memory_space<vmem>>, vector<8x128xf32>
    %c0_1 = arith.constant 0 : index
    %c0_2 = arith.constant 0 : index
    %1 = vector.load %arg2[%c0_1, %c0_2] : memref<8x128xf32, #tpu.memory_space<vmem>>, vector<8x128xf32>
    %cst = arith.constant dense<0xFF800000> : vector<8xf32>
    %2 = vector.multi_reduction <maximumf>, %0, %cst [1] : vector<8x128xf32> to vector<8xf32>
    %3 = vector.shape_cast %2 : vector<8xf32> to vector<8x1xf32>
    %4 = vector.broadcast %3 : vector<8x1xf32> to vector<8x128xf32>
    %5 = arith.subf %0, %4 : vector<8x128xf32>
    %6 = math.exp %5 : vector<8x128xf32>
    %cst_3 = arith.constant dense<0.000000e+00> : vector<8xf32>
    %7 = vector.multi_reduction <add>, %6, %cst_3 [1] : vector<8x128xf32> to vector<8xf32>
    %8 = vector.shape_cast %7 : vector<8xf32> to vector<8x1xf32>
    %9 = math.log %8 : vector<8x1xf32>
    %cst_4 = arith.constant dense<0.000000e+00> : vector<8xf32>
    %10 = vector.multi_reduction <add>, %1, %cst_4 [1] : vector<8x128xf32> to vector<8xf32>
    %11 = vector.shape_cast %10 : vector<8xf32> to vector<8x1xf32>
    %12 = arith.mulf %1, %0 : vector<8x128xf32>
    %cst_5 = arith.constant dense<0.000000e+00> : vector<8xf32>
    %13 = vector.multi_reduction <add>, %12, %cst_5 [1] : vector<8x128xf32> to vector<8xf32>
    %14 = vector.shape_cast %13 : vector<8xf32> to vector<8x1xf32>
    %15 = arith.addf %3, %9 : vector<8x1xf32>
    %16 = arith.mulf %15, %11 : vector<8x1xf32>
    %17 = arith.subf %16, %14 : vector<8x1xf32>
    %18 = tpu.transpose %17, [1, 0] : vector<8x1xf32> -> vector<1x8xf32>
    %19 = vector.shape_cast %18 : vector<1x8xf32> to vector<1x1x8xf32>
    %c0_6 = arith.constant 0 : index
    %c0_7 = arith.constant 0 : index
    %c0_8 = arith.constant 0 : index
    %20 = vector.load %arg3[%c0_6, %c0_7, %c0_8] : memref<1x1x8xf32, #tpu.memory_space<vmem>>, vector<1x1x8xf32>
    tpu.vector_store %arg3[%c0_6, %c0_7, %c0_8], %19 {strides = array<i32>} : memref<1x1x8xf32, #tpu.memory_space<vmem>>, vector<1x1x8xf32>,
    return
  }
  func.func @transform_0(%arg0: i32) -> (i32, i32) {
    %c0_i32 = arith.constant 0 : i32
    %c0_i32_0 = arith.constant 0 : i32
    return %arg0, %c0_i32 : i32, i32
  }
  func.func @transform_1(%arg0: i32) -> (i32, i32) {
    %c0_i32 = arith.constant 0 : i32
    %c0_i32_0 = arith.constant 0 : i32
    return %arg0, %c0_i32 : i32, i32
  }
  func.func @transform_2(%arg0: i32) -> (i32, i32, i32) {
    %c0_i32 = arith.constant 0 : i32
    %c0_i32_0 = arith.constant 0 : i32
    %c0_i32_1 = arith.constant 0 : i32
    return %arg0, %c0_i32, %c0_i32_0 : i32, i32, i32
  }
}

</mosaic_0001>

<bundles_post_ra>
// kernel: tpu_custom_call.1
= control target key start
LH: loop header
LB: loop body
LE: loop exit
PB: predicated region body
PF: predicated region fallthrough
CT: control target
= control target key end

     0   :  { %7 = vsyncpa [#allocation3], 0  ;;  %s239_s0 = inlined_call_operand.hbm [shape: f32[8,128], index: 0, kind: input, shape index: {}]   ;;  %s240_s1 = inlined_call_operand.hbm [shape: f32[8,128], index: 1, kind: input, shape index: {}]   ;;  %s241_s2 = inlined_call_operand.hbm [shape: f32[1,1,8], index: 2, kind: output, shape index: {}]  }
   0x1   :  { %8 = vsyncpa [#allocation6], 0 }
   0x2   :  { %9 = vsyncpa [#allocation4], 0  ;;  %s185_s9 = smov [#allocation2]   ;;  %s186_s11 = smov [#allocation5]  }
   0x3   :  { %s16_s10 = sshll.u32 %s185_s9, 4  ;;  %s26_s12 = sshll.u32 %s186_s11, 4  ;;  %s17_s10 = int_to_ptr.vmem [resolvable:$true] %s16_s10  ;;  %s27_s12 = int_to_ptr.vmem [resolvable:$true] %s26_s12 }
   0x4   :  { %s113_s15 = scalar_lea.hbm %s239_s0, 128 }
   0x5   :  { %p114_p0 = scmp.ne.s32.totalorder %s239_s0, %s113_s15  ;;  %p117_p1 = scmp.lt.u32.totalorder %s113_s15, %s239_s0 }
   0x7   :  { %p119_p2 = pnand %p117_p1, %p114_p0 }
   0x9   :  { %122 = shalt.err (!%p119_p2)
}
   0xa   :  { %s123_s20 = scalar_lea.vmem %s17_s10, 128  ;;  %p128_p4 = scmp.lt.s32.totalorder %s17_s10, %s17_s10 }
   0xb   :  { %p124_p3 = scmp.ne.s32.totalorder %s17_s10, %s123_s20  ;;  %p129_p5 = scmp.lt.s32.totalorder %s123_s20, %s123_s20 }
   0xd   :  { %p130_p6 = por %p129_p5, %p128_p4 }
   0xf   :  { %p131_p7 = pnand %p130_p6, %p124_p3 }
  0x11   :  { %134 = shalt.err (!%p131_p7)
}
  0x12   :  { %19 = dma.hbm_to_vmem [thread:$0]  %s239_s0, 128, %s17_s10, [#allocation3]  }
  0x13   :  { %s135_s25 = scalar_lea.hbm %s240_s1, 128 }
  0x14   :  { %p136_p8 = scmp.ne.s32.totalorder %s240_s1, %s135_s25  ;;  %p139_p9 = scmp.lt.u32.totalorder %s135_s25, %s240_s1 }
  0x16   :  { %p141_p10 = pnand %p139_p9, %p136_p8 }
  0x18   :  { %144 = shalt.err (!%p141_p10)
}
  0x19   :  { %s145_s30 = scalar_lea.vmem %s27_s12, 128  ;;  %p150_p12 = scmp.lt.s32.totalorder %s27_s12, %s27_s12 }
  0x1a   :  { %p146_p11 = scmp.ne.s32.totalorder %s27_s12, %s145_s30  ;;  %p151_p13 = scmp.lt.s32.totalorder %s145_s30, %s145_s30 }
  0x1c   :  { %p152_p0 = por %p151_p13, %p150_p12 }
  0x1e   :  { %p153_p1 = pnand %p152_p0, %p146_p11 }
  0x20   :  { %156 = shalt.err (!%p153_p1)
}
  0x21   :  { %29 = dma.hbm_to_vmem [thread:$0]  %s240_s1, 128, %s27_s12, [#allocation6]  }
  0x22   :  { %179 = dma.done.wait [#allocation3], 128  }
  0x23   :  { %180 = vsyncadd [#allocation3], 4294967168 }
  0x24   :  { %181 = dma.done.wait [#allocation6], 128  }
  0x25   :  { %182 = vsyncadd [#allocation6], 4294967168  ;;  %v36_v0 = vld [vmem:[#allocation2] sm:$0xff]  ;;  %v37_v1 = vld [vmem:[#allocation5] sm:$0xff]  ;;  %s187_s1 = smov [#allocation7]   ;;  %vm87_vm0 = vcmask 57344  }
  0x26   :  { %38 = vmax.xlane.f32.xlu0 %v36_v0  ;;  %47 = vadd.xlane.f32.xlu1 %v37_v1  ;;  %v49_v2 = vmul.f32 %v37_v1, %v36_v0  ;;  %s95_s4 = sshll.u32 %s187_s1, 4  ;;  %s96_s4 = int_to_ptr.vmem [resolvable:$true] %s95_s4 }
  0x27   :  { %s157_s5 = scalar_lea.vmem %s96_s4, 16  ;;  %s161_s6 = scalar_lea.vmem %s96_s4, 32 }
  0x28   :  { %p158_p2 = scmp.ne.s32.totalorder %s96_s4, %s157_s5  ;;  %p162_p3 = scmp.lt.s32.totalorder %s96_s4, %s96_s4 }
  0x29   :  { %p163_p4 = scmp.lt.s32.totalorder %s161_s6, %s157_s5 }
  0x2a   :  { %50 = vadd.xlane.f32.xlu1 %v49_v2 }
  0x2b   :  { %p164_p5 = por %p163_p4, %p162_p3 }
  0x2d   :  { %p165_p6 = pnand %p164_p5, %p158_p2 }
  0xb3   :  { %v39_v3 = vpop.xlane.xlu0 %38  ;;  %v48_v8 = vpop.xlane.xlu1 %47 }
  0xb4   :  { %v40_v4 = vsub.f32 %v36_v0, %v39_v3 }
  0xb6   :  { %v41_v5 = vmul.f32 1.442695, %v40_v4 }
  0xb7   :  { %v51_v12 = vpop.xlane.xlu1 %50 }
  0xb8   :  { %109 = vpow2.f32 %v41_v5 }
  0xc2   :  { %v110_v6 = vpop.eup %109 }
  0xc3   :  { %43 = vadd.xlane.f32.xlu0 %v110_v6 }
 0x150   :  { %v44_v7 = vpop.xlane.xlu0 %43 }
 0x151   :  { %111 = vlog2.f32 %v44_v7 }
 0x15b   :  { %v112_v9 = vpop.eup %111 }
 0x15c   :  { %v46_v10 = vmul.f32 0.6931472, %v112_v9 }
 0x15e   :  { %v52_v11 = vadd.f32 %v46_v10, %v39_v3 }
 0x160   :  { %v53_v13 = vmul.f32 %v52_v11, %v48_v8 }
 0x162   :  { %v54_v14 = vsub.f32 %v53_v13, %v51_v12 }
 0x164   :  { %55 = vxpose.xlu0.b32.start.end [1/1] (short) (narrow) %v54_v14, 8 }
 0x1e4   :  { %v71_v15 = vpop.trf.xlu0 }
 0x1e5   :  { %88 = vst.msk [vmem:[#allocation7] sm:$0x1] %vm87_vm0, %v71_v15 }
 0x1e6   :  { %168 = shalt.err (!%p165_p6)
}
 0x1e7   :  { %s169_s9 = scalar_lea.hbm %s241_s2, 16 }
 0x1e8   :  { %p170_p7 = scmp.ne.s32.totalorder %s241_s2, %s169_s9  ;;  %p173_p8 = scmp.lt.u32.totalorder %s169_s9, %s241_s2 }
 0x1ea   :  { %p175_p9 = pnand %p173_p8, %p170_p7 }
 0x1ec   :  { %178 = shalt.err (!%p175_p9)
}
 0x1ed   :  { %98 = dma.vmem_to_hbm [thread:$0]  %s96_s4, 16, %s241_s2, [#allocation4]  }
 0x1ee   :  { %183 = dma.done.wait [#allocation4], 16  }
 0x1ef   :  { %184 = vsyncadd [#allocation4], 4294967280 }
 0x1f0   :  { %102 = vsyncpa [#allocation3], 1 }
 0x1f1   :  { %103 = vsyncpa [#allocation6], 1 }
 0x1f2   :  { %104 = vsyncpa [#allocation4], 1 }

</bundles_post_ra>
